<compile_context>
chip_gen: v7x
topology: tpu7x:2x2x1
jax: 0.10.0
libtpu: 0.0.40
codegen_flags: <defaults>
</compile_context>

<pallas_src>
import math
import jax
import jax.numpy as jnp
from jax.experimental import pallas as pl
from jax.experimental.pallas import tpu as pltpu

# ----------------------- configuration (small shapes) -----------------------
BATCH = 2
IN_CH = 3
IMG_HW = 16
PATCH = 8
NUM_PATCHES = (IMG_HW // PATCH) ** 2          # 4
PATCH_DIM = IN_CH * PATCH * PATCH             # 192
FEATURE_DIM = 32
NUM_HEADS = 4
HEAD_DIM = FEATURE_DIM // NUM_HEADS           # 8
NUM_LABELS = 8                                # == number of text prompts (L)
B_PAD = 8                                     # sublane-padded batch rows
LOGITS_PAD = 128                              # lane-dense padded logits width
# dropout is inactive (module runs in eval mode) -> identity.

D = FEATURE_DIM

# ---- constant-slab row offsets (all multiples of 8 -> tile-aligned slices) ----
OFF_WPATCH = 0                     # (192, 32)  patch-embedding weight
OFF_BIAS   = OFF_WPATCH + PATCH_DIM    # 192   (1, 32)   b_patch + mean(pos_emb)
OFF_WQ     = OFF_BIAS + 8              # 200   (32, 32)  Wq * 1/sqrt(dh), head-packed cols
OFF_KBD    = OFF_WQ + D                # 232   (32, 32)  block-diag K   (constant)
OFF_ONES   = OFF_KBD + D               # 264   (32, 32)  block-diag ones (softmax sums)
OFF_VBD    = OFF_ONES + D              # 296   (32, 32)  block-diag V   (constant)
OFF_WCIMG  = OFF_VBD + D               # 328   (32, 128) image-branch classifier (padded)
OFF_WOWC   = OFF_WCIMG + D             # 360   (32, 128) W_o @ Wc_att            (padded)
OFF_BC     = OFF_WOWC + D              # 392   (1, 128)  classifier bias         (padded)
SLAB_ROWS  = OFF_BC + 8                # 400

_VMEM = pl.BlockSpec(memory_space=pltpu.MemorySpace.VMEM)


# ---------------- fused encoder + cross-attention classifier kernel ----------
def _fused_kernel(pooled_ref, slab_ref, logits_ref):
    # ---- image encoder: (already mean-pooled) patch embed -> L2 norm --------
    pooled = pooled_ref[...]                                          # (8, 192)
    feat = jnp.dot(pooled, slab_ref[OFF_WPATCH:OFF_WPATCH + PATCH_DIM, 0:D],
                   preferred_element_type=jnp.float32)                # (8, 32)
    feat = feat + slab_ref[OFF_BIAS:OFF_BIAS + 1, 0:D]                # folded bias
    inv_norm = jax.lax.rsqrt(
        jnp.sum(feat * feat, axis=-1, keepdims=True) + 1e-6)
    img = feat * inv_norm                                             # (8, 32)

    # ---- multi-head cross attention, lane-packed over heads -----------------
    # Q has heads packed along lanes; K/V are constant block-diagonal matrices.
    q = jnp.dot(img, slab_ref[OFF_WQ:OFF_WQ + D, 0:D],
                preferred_element_type=jnp.float32)                   # (8, 32)
    s = jnp.dot(q, slab_ref[OFF_KBD:OFF_KBD + D, 0:D],
                preferred_element_type=jnp.float32)                   # (8, H*L)
    # global per-row max is softmax-invariant per (b, head)
    s = s - jnp.max(s, axis=-1, keepdims=True)
    e = jnp.exp(s)
    denom = jnp.dot(e, slab_ref[OFF_ONES:OFF_ONES + D, 0:D],
                    preferred_element_type=jnp.float32)               # per-head sums
    p = e * pl.reciprocal(denom, approx=True)                         # (8, H*L)
    ctx = jnp.dot(p, slab_ref[OFF_VBD:OFF_VBD + D, 0:D],
                  preferred_element_type=jnp.float32)                 # (8, H*dh)

    # ---- 'concat' fusion + linear head (W_o folded into the att branch) -----
    logits = (jnp.dot(img, slab_ref[OFF_WCIMG:OFF_WCIMG + D, :],
                      preferred_element_type=jnp.float32)
              + jnp.dot(ctx, slab_ref[OFF_WOWC:OFF_WOWC + D, :],
                        preferred_element_type=jnp.float32)
              + slab_ref[OFF_BC:OFF_BC + 1, :])
    logits_ref[...] = logits                                          # (8, 128)


# ------------------------------- glue / wrapper ------------------------------
def init_params():
    # TODO(synk): the real AnomalyEncoder loads a pretrained CLIP backbone and
    # learned mask/prompt weights from disk (torch.load); here the encoder
    # weights are deterministic synthetic parameters with the same dataflow.
    k = jax.random.PRNGKey(42)
    ks = jax.random.split(k, 10)
    s = 0.05
    w_patch = jax.random.normal(ks[0], (PATCH_DIM, D), jnp.float32) * s
    b_patch = jax.random.normal(ks[1], (1, D), jnp.float32) * s
    pos_emb = jax.random.normal(ks[2], (NUM_PATCHES, D), jnp.float32) * s
    text_emb = jax.random.normal(ks[3], (NUM_LABELS, D), jnp.float32)
    wq = jax.random.normal(ks[4], (D, D), jnp.float32) * s
    wk = jax.random.normal(ks[5], (D, D), jnp.float32) * s
    wv = jax.random.normal(ks[6], (D, D), jnp.float32) * s
    wo = jax.random.normal(ks[7], (D, D), jnp.float32) * s
    wc_img = jax.random.normal(ks[8], (D, NUM_LABELS), jnp.float32) * s
    wc_att = jax.random.normal(ks[9], (D, NUM_LABELS), jnp.float32) * s
    bc = jnp.zeros((NUM_LABELS,), jnp.float32)

    # ---- one-time folds (off the per-call hot path) --------------------------
    # mean-pool is linear: mean_p(x_p @ W + b + pos_p) = mean_p(x_p) @ W + b + mean(pos)
    bias_mean = b_patch + jnp.mean(pos_emb, axis=0, keepdims=True)        # (1, D)
    # text prompt features are constant parameters -> normalize & project once
    text_norm = text_emb * jax.lax.rsqrt(
        jnp.sum(text_emb * text_emb, axis=-1, keepdims=True) + 1e-6)      # (L, D)
    wq_scaled = wq * (1.0 / math.sqrt(HEAD_DIM))                          # fold 1/sqrt(dh)
    k_full = text_norm @ wk                                               # (L, D)
    v_full = text_norm @ wv                                               # (L, D)

    # lane-pack constant K / V into block-diagonal (D, D) matrices:
    #   S   = Q @ K_bd  with S[:, h*L:(h+1)*L]  = q_h @ k_h^T
    #   ctx = P @ V_bd  with ctx[:, h*dh:(h+1)*dh] = p_h @ v_h
    k_bd = jnp.zeros((D, D), jnp.float32)
    v_bd = jnp.zeros((D, D), jnp.float32)
    for h in range(NUM_HEADS):
        kh = k_full[:, h * HEAD_DIM:(h + 1) * HEAD_DIM]                   # (L, dh)
        vh = v_full[:, h * HEAD_DIM:(h + 1) * HEAD_DIM]
        k_bd = k_bd.at[h * HEAD_DIM:(h + 1) * HEAD_DIM,
                       h * NUM_LABELS:(h + 1) * NUM_LABELS].set(kh.T)
        v_bd = v_bd.at[h * NUM_LABELS:(h + 1) * NUM_LABELS,
                       h * HEAD_DIM:(h + 1) * HEAD_DIM].set(vh)
    # block-diag ones: per-head softmax denominators via one matmul
    ones_bd = jnp.kron(jnp.eye(NUM_HEADS, dtype=jnp.float32),
                       jnp.ones((NUM_LABELS, NUM_LABELS), jnp.float32))   # (D, D)

    # fold W_o into the attention-branch classifier
    wo_wc = wo @ wc_att                                                   # (D, NUM_LABELS)

    # ---- assemble the single constant slab (SLAB_ROWS, 128) -----------------
    slab = jnp.zeros((SLAB_ROWS, LOGITS_PAD), jnp.float32)
    slab = slab.at[OFF_WPATCH:OFF_WPATCH + PATCH_DIM, 0:D].set(w_patch)
    slab = slab.at[OFF_BIAS:OFF_BIAS + 1, 0:D].set(bias_mean)
    slab = slab.at[OFF_WQ:OFF_WQ + D, 0:D].set(wq_scaled)
    slab = slab.at[OFF_KBD:OFF_KBD + D, 0:D].set(k_bd)
    slab = slab.at[OFF_ONES:OFF_ONES + D, 0:D].set(ones_bd)
    slab = slab.at[OFF_VBD:OFF_VBD + D, 0:D].set(v_bd)
    slab = slab.at[OFF_WCIMG:OFF_WCIMG + D, 0:NUM_LABELS].set(wc_img)
    slab = slab.at[OFF_WOWC:OFF_WOWC + D, 0:NUM_LABELS].set(wo_wc)
    slab = slab.at[OFF_BC:OFF_BC + 1, 0:NUM_LABELS].set(bc[None, :])
    return {"slab": slab}


@jax.jit
def forward(x, params):
    # wrapper glue: mean over patches (valid while the encoder is linear),
    # flatten to the patch feature vector and pad batch to 8 sublanes.
    b, c, hh, ww = x.shape
    hp, wp = hh // PATCH, ww // PATCH
    pooled = x.reshape(b, c, hp, PATCH, wp, PATCH).mean(axis=(2, 4))      # (B, C, p, p)
    pooled = pooled.reshape(b, c * PATCH * PATCH).astype(jnp.float32)     # (B, 192)
    pooled = jnp.zeros((B_PAD, PATCH_DIM), jnp.float32).at[:b].set(pooled)

    logits_pad = pl.pallas_call(
        _fused_kernel,
        out_shape=jax.ShapeDtypeStruct((B_PAD, LOGITS_PAD), jnp.float32),
        in_specs=[_VMEM, _VMEM],
        out_specs=_VMEM,
    )(pooled, params["slab"])
    return logits_pad[:b, :NUM_LABELS]                                    # (B, num_labels)


if __name__ == "__main__":
    assert BATCH <= B_PAD
    key = jax.random.PRNGKey(0)
    x = jax.random.normal(key, (BATCH, IN_CH, IMG_HW, IMG_HW), jnp.float32)
    params = init_params()
    logits = forward(x, params)
    jax.block_until_ready(logits)
    assert logits.shape == (BATCH, NUM_LABELS), logits.shape
    assert bool(jnp.all(jnp.isfinite(logits)))
    print("KERNEL_OK")
</pallas_src>

<mosaic_0001>
module attributes {stable_mosaic.version = 11 : i64} {
  func.func @_fused_kernel(%arg0: memref<8x192xf32, #tpu.memory_space<vmem>>, %arg1: memref<400x128xf32, #tpu.memory_space<vmem>>, %arg2: memref<8x128xf32, #tpu.memory_space<vmem>>) attributes {dimension_semantics = [], scalar_prefetch = 0 : i64, scratch_operands = 0 : i64, tpu.core_type = #tpu.core_type<tc>} {
    %c0 = arith.constant 0 : index
    %c0_0 = arith.constant 0 : index
    %0 = vector.load %arg0[%c0, %c0_0] : memref<8x192xf32, #tpu.memory_space<vmem>>, vector<8x192xf32>
    %c0_1 = arith.constant 0 : index
    %c0_2 = arith.constant 0 : index
    %1 = vector.load %arg1[%c0_1, %c0_2] : memref<400x128xf32, #tpu.memory_space<vmem>>, vector<192x32xf32>
    %cst = arith.constant dense<0.000000e+00> : vector<8x32xf32>
    %2 = tpu.matmul %0, %1, %cst {dimension_numbers = #tpu.dot_dimension_numbers<[1], [0], [0], [1], [0, 0, 1, 1], [], []>} : vector<8x192xf32>, vector<192x32xf32>, vector<8x32xf32> -> vector<8x32xf32>
    %c192 = arith.constant 192 : index
    %c0_3 = arith.constant 0 : index
    %3 = vector.load %arg1[%c192, %c0_3] : memref<400x128xf32, #tpu.memory_space<vmem>>, vector<1x32xf32>
    %4 = vector.broadcast %3 : vector<1x32xf32> to vector<8x32xf32>
    %5 = arith.addf %2, %4 : vector<8x32xf32>
    %6 = arith.mulf %5, %5 : vector<8x32xf32>
    %cst_4 = arith.constant dense<0.000000e+00> : vector<8xf32>
    %7 = vector.multi_reduction <add>, %6, %cst_4 [1] : vector<8x32xf32> to vector<8xf32>
    %8 = vector.shape_cast %7 : vector<8xf32> to vector<8x1xf32>
    %cst_5 = arith.constant 9.99999997E-7 : f32
    %9 = vector.broadcast %cst_5 : f32 to vector<8x1xf32>
    %10 = arith.addf %8, %9 : vector<8x1xf32>
    %11 = math.rsqrt %10 : vector<8x1xf32>
    %12 = vector.broadcast %11 : vector<8x1xf32> to vector<8x32xf32>
    %13 = arith.mulf %5, %12 : vector<8x32xf32>
    %c200 = arith.constant 200 : index
    %c0_6 = arith.constant 0 : index
    %14 = vector.load %arg1[%c200, %c0_6] : memref<400x128xf32, #tpu.memory_space<vmem>>, vector<32x32xf32>
    %cst_7 = arith.constant dense<0.000000e+00> : vector<8x32xf32>
    %15 = tpu.matmul %13, %14, %cst_7 {dimension_numbers = #tpu.dot_dimension_numbers<[1], [0], [0], [1], [0, 0, 1, 1], [], []>} : vector<8x32xf32>, vector<32x32xf32>, vector<8x32xf32> -> vector<8x32xf32>
    %c232 = arith.constant 232 : index
    %c0_8 = arith.constant 0 : index
    %16 = vector.load %arg1[%c232, %c0_8] : memref<400x128xf32, #tpu.memory_space<vmem>>, vector<32x32xf32>
    %cst_9 = arith.constant dense<0.000000e+00> : vector<8x32xf32>
    %17 = tpu.matmul %15, %16, %cst_9 {dimension_numbers = #tpu.dot_dimension_numbers<[1], [0], [0], [1], [0, 0, 1, 1], [], []>} : vector<8x32xf32>, vector<32x32xf32>, vector<8x32xf32> -> vector<8x32xf32>
    %cst_10 = arith.constant dense<0xFF800000> : vector<8xf32>
    %18 = vector.multi_reduction <maximumf>, %17, %cst_10 [1] : vector<8x32xf32> to vector<8xf32>
    %19 = vector.shape_cast %18 : vector<8xf32> to vector<8x1xf32>
    %20 = vector.broadcast %19 : vector<8x1xf32> to vector<8x32xf32>
    %21 = arith.subf %17, %20 : vector<8x32xf32>
    %22 = math.exp %21 : vector<8x32xf32>
    %c264 = arith.constant 264 : index
    %c0_11 = arith.constant 0 : index
    %23 = vector.load %arg1[%c264, %c0_11] : memref<400x128xf32, #tpu.memory_space<vmem>>, vector<32x32xf32>
    %cst_12 = arith.constant dense<0.000000e+00> : vector<8x32xf32>
    %24 = tpu.matmul %22, %23, %cst_12 {dimension_numbers = #tpu.dot_dimension_numbers<[1], [0], [0], [1], [0, 0, 1, 1], [], []>} : vector<8x32xf32>, vector<32x32xf32>, vector<8x32xf32> -> vector<8x32xf32>
    %25 = tpu.reciprocal %24 {approx = true} : vector<8x32xf32> -> vector<8x32xf32>
    %26 = arith.mulf %22, %25 : vector<8x32xf32>
    %c296 = arith.constant 296 : index
    %c0_13 = arith.constant 0 : index
    %27 = vector.load %arg1[%c296, %c0_13] : memref<400x128xf32, #tpu.memory_space<vmem>>, vector<32x32xf32>
    %cst_14 = arith.constant dense<0.000000e+00> : vector<8x32xf32>
    %28 = tpu.matmul %26, %27, %cst_14 {dimension_numbers = #tpu.dot_dimension_numbers<[1], [0], [0], [1], [0, 0, 1, 1], [], []>} : vector<8x32xf32>, vector<32x32xf32>, vector<8x32xf32> -> vector<8x32xf32>
    %c328 = arith.constant 328 : index
    %c0_15 = arith.constant 0 : index
    %29 = vector.load %arg1[%c328, %c0_15] : memref<400x128xf32, #tpu.memory_space<vmem>>, vector<32x128xf32>
    %cst_16 = arith.constant dense<0.000000e+00> : vector<8x128xf32>
    %30 = tpu.matmul %13, %29, %cst_16 {dimension_numbers = #tpu.dot_dimension_numbers<[1], [0], [0], [1], [0, 0, 1, 1], [], []>} : vector<8x32xf32>, vector<32x128xf32>, vector<8x128xf32> -> vector<8x128xf32>
    %c360 = arith.constant 360 : index
    %c0_17 = arith.constant 0 : index
    %31 = vector.load %arg1[%c360, %c0_17] : memref<400x128xf32, #tpu.memory_space<vmem>>, vector<32x128xf32>
    %cst_18 = arith.constant dense<0.000000e+00> : vector<8x128xf32>
    %32 = tpu.matmul %28, %31, %cst_18 {dimension_numbers = #tpu.dot_dimension_numbers<[1], [0], [0], [1], [0, 0, 1, 1], [], []>} : vector<8x32xf32>, vector<32x128xf32>, vector<8x128xf32> -> vector<8x128xf32>
    %33 = arith.addf %30, %32 : vector<8x128xf32>
    %c392 = arith.constant 392 : index
    %c0_19 = arith.constant 0 : index
    %34 = vector.load %arg1[%c392, %c0_19] : memref<400x128xf32, #tpu.memory_space<vmem>>, vector<1x128xf32>
    %35 = vector.broadcast %34 : vector<1x128xf32> to vector<8x128xf32>
    %36 = arith.addf %33, %35 : vector<8x128xf32>
    %c0_20 = arith.constant 0 : index
    %c0_21 = arith.constant 0 : index
    %37 = vector.load %arg2[%c0_20, %c0_21] : memref<8x128xf32, #tpu.memory_space<vmem>>, vector<8x128xf32>
    tpu.vector_store %arg2[%c0_20, %c0_21], %36 {strides = array<i32>} : memref<8x128xf32, #tpu.memory_space<vmem>>, vector<8x128xf32>,
    return
  }
}

</mosaic_0001>

<bundles_post_ra>
// kernel: forward.1
= control target key start
LH: loop header
LB: loop body
LE: loop exit
PB: predicated region body
PF: predicated region fallthrough
CT: control target
= control target key end

     0   :  { %v788_v0 = vmov 0.0|0.0   ;;  %vm42_vm0 = vcmask 523264   ;;  %vm117_vm1 = vcmask 261120   ;;  %vm789_vm2 = vmmov 0   ;;  %s1013_s1 = inlined_call_operand.vmem [shape: f32[400,128], index: 1, kind: input, shape index: {}]   ;;  %s1014_s0 = inlined_call_operand.vmem [shape: f32[8,192], index: 0, kind: input, shape index: {}]   ;;  %s1015_s2 = inlined_call_operand.vmem [shape: f32[8,128], index: 2, kind: output, shape index: {}]  }
   0x1   :  { %707 = vmatprep.subr.bf16.mxu0 %v788_v0  ;;  %v13_v1 = vld [vmem:[%s1013_s1] sm:$0xff]  ;;  %v14_v2 = vld [vmem:[%s1013_s1 + $0x8] sm:$0xff]  ;;  %v15_v3 = vld [vmem:[%s1013_s1 + $0x10] sm:$0xff]  ;;  %743 = vmatprep.subr.bf16.mxu1 %v788_v0  ;;  %v790_v50 = vmov 0.0  }
   0x2   :  { %v708_v4 = vpack.c.bf16 %v14_v2, %v13_v1  ;;  %v16_v5 = vld [vmem:[%s1013_s1 + $0x18] sm:$0xff]  ;;  %v17_v7 = vld [vmem:[%s1013_s1 + $0x20] sm:$0xff]  ;;  %v18_v8 = vld [vmem:[%s1013_s1 + $0x28] sm:$0xff]  ;;  %649 = vmatprep.mubr.msk.f32.mxu1 %vm789_vm2, %v790_v50 }
   0x3   :  { %v711_v6 = vpack.c.bf16 %v16_v5, %v15_v3  ;;  %v714_v9 = vpack.c.bf16 %v18_v8, %v17_v7  ;;  %v19_v10 = vld [vmem:[%s1013_s1 + $0x30] sm:$0xff]  ;;  %v20_v11 = vld [vmem:[%s1013_s1 + $0x38] sm:$0xff]  ;;  %v12_v12 = vld [vmem:[%s1014_s0 + $0x8] sm:$0xff] }
   0x4   :  { %709 = vmatpush1.bf16.msra.mxu0 %v708_v4  ;;  %603 = vmatprep.mubr.msk.f32.mxu0 %vm42_vm0, %v12_v12  ;;  %v717_v13 = vpack.c.bf16 %v20_v11, %v19_v10  ;;  %v21_v14 = vld [vmem:[%s1013_s1 + $0x40] sm:$0xff]  ;;  %v22_v15 = vld [vmem:[%s1013_s1 + $0x48] sm:$0xff]  ;;  %v23_v17 = vld [vmem:[%s1013_s1 + $0x50] sm:$0xff] }
   0x5   :  { %710 = vmatprep.subr.bf16.mxu0 %v788_v0  ;;  %v720_v16 = vpack.c.bf16 %v22_v15, %v21_v14  ;;  %v24_v18 = vld [vmem:[%s1013_s1 + $0x58] sm:$0xff]  ;;  %v25_v20 = vld [vmem:[%s1013_s1 + $0x60] sm:$0xff]  ;;  %v26_v21 = vld [vmem:[%s1013_s1 + $0x68] sm:$0xff] }
   0x6   :  { %v723_v19 = vpack.c.bf16 %v24_v18, %v23_v17  ;;  %v726_v22 = vpack.c.bf16 %v26_v21, %v25_v20  ;;  %v27_v23 = vld [vmem:[%s1013_s1 + $0x70] sm:$0xff]  ;;  %v28_v24 = vld [vmem:[%s1013_s1 + $0x78] sm:$0xff]  ;;  %v29_v26 = vld [vmem:[%s1013_s1 + $0x80] sm:$0xff] }
   0x7   :  { %v729_v25 = vpack.c.bf16 %v28_v24, %v27_v23  ;;  %v30_v27 = vld [vmem:[%s1013_s1 + $0x88] sm:$0xff]  ;;  %v31_v29 = vld [vmem:[%s1013_s1 + $0x90] sm:$0xff]  ;;  %v32_v30 = vld [vmem:[%s1013_s1 + $0x98] sm:$0xff] }
   0x8   :  { %712 = vmatpush1.bf16.msra.mxu0 %v711_v6  ;;  %v732_v28 = vpack.c.bf16 %v30_v27, %v29_v26  ;;  %v735_v31 = vpack.c.bf16 %v32_v30, %v31_v29  ;;  %v33_v32 = vld [vmem:[%s1013_s1 + $0xa0] sm:$0xff]  ;;  %v34_v33 = vld [vmem:[%s1013_s1 + $0xa8] sm:$0xff]  ;;  %v35_v35 = vld [vmem:[%s1013_s1 + $0xb0] sm:$0xff] }
   0x9   :  { %713 = vmatprep.subr.bf16.mxu0 %v788_v0  ;;  %v738_v34 = vpack.c.bf16 %v34_v33, %v33_v32  ;;  %v36_v36 = vld [vmem:[%s1013_s1 + $0xb8] sm:$0xff]  ;;  %v11_v38 = vld [vmem:[%s1014_s0] sm:$0xff]  ;;  %v124_v45 = vld [vmem:[%s1013_s1 + $0xc8] sm:$0xff] }
   0xa   :  { %v741_v37 = vpack.c.bf16 %v36_v36, %v35_v35  ;;  %v602_v39 = vld [vmem:[%s1013_s1 + $0xc0] ss:$0 sm:$0xff]  ;;  %v125_v46 = vld [vmem:[%s1013_s1 + $0xd0] sm:$0xff]  ;;  %v126_v47 = vld [vmem:[%s1013_s1 + $0xd8] sm:$0xff] }
   0xb   :  { %v744_v48 = vpack.c.bf16 %v125_v46, %v124_v45  ;;  %v127_v49 = vld [vmem:[%s1013_s1 + $0xe0] sm:$0xff]  ;;  %v201_v54 = vld [vmem:[%s1013_s1 + $0xe8] sm:$0xff]  ;;  %v202_v55 = vld [vmem:[%s1013_s1 + $0xf0] sm:$0xff] }
   0xc   :  { %715 = vmatpush1.bf16.msra.mxu0 %v714_v9  ;;  %v747_v51 = vpack.c.bf16 %v127_v49, %v126_v47  ;;  %v750_v57 = vpack.c.bf16 %v202_v55, %v201_v54  ;;  %v203_v59 = vld [vmem:[%s1013_s1 + $0xf8] sm:$0xff]  ;;  %v204_v60 = vld [vmem:[%s1013_s1 + $0x100] sm:$0xff]  ;;  %v284_v4 = vld [vmem:[%s1013_s1 + $0x108] sm:$0xff] }
   0xd   :  { %716 = vmatprep.subr.bf16.mxu0 %v788_v0  ;;  %745 = vmatpush3.bf16.msra.mxu1 %v744_v48  ;;  %v753_v61 = vpack.c.bf16 %v204_v60, %v203_v59  ;;  %v285_v5 = vld [vmem:[%s1013_s1 + $0x110] sm:$0xff]  ;;  %v286_v6 = vld [vmem:[%s1013_s1 + $0x118] sm:$0xff]  ;;  %v287_v8 = vld [vmem:[%s1013_s1 + $0x120] sm:$0xff] }
   0xe   :  { %746 = vmatprep.subr.bf16.mxu1 %v788_v0  ;;  %v756_v7 = vpack.c.bf16 %v285_v5, %v284_v4  ;;  %v759_v9 = vpack.c.bf16 %v287_v8, %v286_v6  ;;  %v363_v14 = vld [vmem:[%s1013_s1 + $0x128] sm:$0xff]  ;;  %v364_v15 = vld [vmem:[%s1013_s1 + $0x130] sm:$0xff]  ;;  %v365_v17 = vld [vmem:[%s1013_s1 + $0x138] sm:$0xff] }
   0xf   :  { %v366_v18 = vld [vmem:[%s1013_s1 + $0x140] sm:$0xff]  ;;  %v445_v23 = vld [vmem:[%s1013_s1 + $0x170] sm:$0xff]  ;;  %v446_v27 = vld [vmem:[%s1013_s1 + $0x178] sm:$0xff] }
  0x10   :  { %718 = vmatpush1.bf16.msra.mxu0 %v717_v13  ;;  %v440_v30 = vld [vmem:[%s1013_s1 + $0x148] sm:$0xff]  ;;  %v442_v33 = vld [vmem:[%s1013_s1 + $0x158] sm:$0xff] }
  0x11   :  { %719 = vmatprep.subr.bf16.mxu0 %v788_v0  ;;  %748 = vmatpush3.bf16.msra.mxu1 %v747_v51 }
  0x12   :  { %749 = vmatprep.subr.bf16.mxu1 %v788_v0 }
  0x14   :  { %721 = vmatpush1.bf16.msra.mxu0 %v720_v16  ;;  %v762_v16 = vpack.c.bf16 %v364_v15, %v363_v14 }
  0x15   :  { %722 = vmatprep.subr.bf16.mxu0 %v788_v0 }
  0x18   :  { %724 = vmatpush1.bf16.msra.mxu0 %v723_v19  ;;  %v765_v19 = vpack.c.bf16 %v366_v18, %v365_v17 }
  0x19   :  { %725 = vmatprep.subr.bf16.mxu0 %v788_v0 }
  0x1c   :  { %727 = vmatpush1.bf16.msra.mxu0 %v726_v22  ;;  %v444_v22 = vld [vmem:[%s1013_s1 + $0x168] sm:$0xff] }
  0x1d   :  { %728 = vmatprep.subr.bf16.mxu0 %v788_v0 }
  0x20   :  { %730 = vmatpush1.bf16.msra.mxu0 %v729_v25  ;;  %v768_v25 = vpack.c.bf16 %v445_v23, %v444_v22 }
  0x21   :  { %731 = vmatprep.subr.bf16.mxu0 %v788_v0 }
  0x24   :  { %733 = vmatpush1.bf16.msra.mxu0 %v732_v28  ;;  %v447_v28 = vld [vmem:[%s1013_s1 + $0x180] sm:$0xff] }
  0x25   :  { %734 = vmatprep.subr.bf16.mxu0 %v788_v0  ;;  %v771_v29 = vpack.c.bf16 %v447_v28, %v446_v27 }
  0x28   :  { %736 = vmatpush1.bf16.msra.mxu0 %v735_v31  ;;  %v441_v31 = vld [vmem:[%s1013_s1 + $0x150] sm:$0xff] }
  0x29   :  { %737 = vmatprep.subr.bf16.mxu0 %v788_v0  ;;  %v774_v32 = vpack.c.bf16 %v441_v31, %v440_v30 }
  0x2c   :  { %739 = vmatpush1.bf16.msra.mxu0 %v738_v34  ;;  %v443_v34 = vld [vmem:[%s1013_s1 + $0x160] sm:$0xff] }
  0x2d   :  { %740 = vmatprep.subr.bf16.mxu0 %v788_v0 }
  0x30   :  { %742 = vmatpush1.bf16.msra.mxu0 %v741_v37  ;;  %v777_v37 = vpack.c.bf16 %v443_v34, %v442_v33 }
  0x33   :  { %111 = vmatmul.mubr.f32.vlgmr.msra.gmra.mrb[0].mxu0 %v11_v38 }
 0x106   :  { %v112_v40 = vpop.f32.mrb[0].mxu0 }
 0x107   :  { %v113_v41 = vadd.f32 %v602_v39, %v112_v40  ;;  %v114_v42 = vpop.f32.mrb[1].mxu0 }
 0x109   :  { %v116_v43 = vmul.f32 %v113_v41, %v113_v41 }
 0x10b   :  { %v118_v44 = vsel %vm117_vm1, %v116_v43, 0.0 }
 0x10c   :  { %119 = vadd.xlane.f32.xlu0 %v118_v44 }
 0x199   :  { %v120_v52 = vpop.xlane.xlu0 %119 }
 0x19a   :  { %v121_v53 = vadd.f32 1e-06, %v120_v52 }
 0x19c   :  { %782 = vrsqrt.f32 %v121_v53 }
 0x1a6   :  { %v783_v56 = vpop.eup %782 }
 0x1a7   :  { %v923_v58 = vmul.f32 %v783_v56, %v113_v41  ;;  %v610_v41 = vld [vmem:[%s1013_s1 + $0x188] ss:$0 sm:$0xff] }
 0x1a9   :  { %650 = vmatmul.mubr.msk.f32.vlgmr.msra.gmra.mrb[0].mxu1 %vm117_vm1, %v923_v58 }
 0x1aa   :  { %751 = vmatpush3.bf16.msra.mxu1 %v750_v57  ;;  %660 = vmatprep.mubr.msk.f32.mxu1 %vm789_vm2, %v790_v50 }
 0x1ab   :  { %752 = vmatprep.subr.bf16.mxu1 %v788_v0 }
 0x1ae   :  { %754 = vmatpush3.bf16.msra.mxu1 %v753_v61 }
 0x1af   :  { %755 = vmatprep.subr.bf16.mxu1 %v788_v0 }
 0x27c   :  { %v197_v62 = vpop.f32.mrb[0].mxu1 }
 0x27d   :  { %v651_v63 = vpop.f32.mrb[1].mxu1  ;;  %661 = vmatmul.mubr.msk.f32.vlgmr.msra.gmra.mrb[2].mxu1 %vm117_vm1, %v197_v62 }
 0x27e   :  { %671 = vmatprep.mubr.msk.f32.mxu1 %vm789_vm2, %v790_v50  ;;  %757 = vmatpush3.bf16.msra.mxu1 %v756_v7 }
 0x27f   :  { %758 = vmatprep.subr.bf16.mxu1 %v788_v0 }
 0x282   :  { %760 = vmatpush3.bf16.msra.mxu1 %v759_v9 }
 0x283   :  { %761 = vmatprep.subr.bf16.mxu1 %v788_v0 }
 0x350   :  { %v274_v1 = vpop.f32.mrb[2].mxu1 }
 0x351   :  { %v662_v2 = vpop.f32.mrb[3].mxu1  ;;  %v278_v3 = vsel %vm117_vm1, %v274_v1, -inf }
 0x352   :  { %279 = vmax.xlane.f32.xlu0 %v278_v3 }
 0x3df   :  { %v280_v10 = vpop.xlane.xlu0 %279 }
 0x3e0   :  { %v281_v11 = vsub.f32 %v274_v1, %v280_v10 }
 0x3e2   :  { %v282_v12 = vmul.f32 1.442695, %v281_v11 }
 0x3e4   :  { %784 = vpow2.f32 %v282_v12 }
 0x3ee   :  { %v785_v13 = vpop.eup %784 }
 0x3ef   :  { %672 = vmatmul.mubr.msk.f32.vlgmr.msra.gmra.mrb[4].mxu1 %vm117_vm1, %v785_v13 }
 0x3f0   :  { %682 = vmatprep.mubr.msk.f32.mxu1 %vm789_vm2, %v790_v50  ;;  %763 = vmatpush3.bf16.msra.mxu1 %v762_v16 }
 0x3f1   :  { %764 = vmatprep.subr.bf16.mxu1 %v788_v0 }
 0x3f4   :  { %766 = vmatpush3.bf16.msra.mxu1 %v765_v19 }
 0x3f5   :  { %767 = vmatprep.subr.bf16.mxu1 %v788_v0 }
 0x4c2   :  { %v357_v20 = vpop.f32.mrb[4].mxu1 }
 0x4c3   :  { %786 = vrcp.f32 %v357_v20  ;;  %v673_v21 = vpop.f32.mrb[5].mxu1 }
 0x4cd   :  { %v787_v24 = vpop.eup %786 }
 0x4ce   :  { %v362_v26 = vmul.f32 %v787_v24, %v785_v13 }
 0x4d0   :  { %683 = vmatmul.mubr.msk.f32.vlgmr.msra.gmra.mrb[6].mxu1 %vm117_vm1, %v362_v26 }
 0x4d1   :  { %769 = vmatpush3.bf16.msra.mxu1 %v768_v25  ;;  %693 = vmatprep.mubr.msk.f32.mxu1 %vm789_vm2, %v790_v50 }
 0x4d2   :  { %770 = vmatprep.subr.bf16.mxu1 %v788_v0 }
 0x4d5   :  { %772 = vmatpush3.bf16.msra.mxu1 %v771_v29 }
 0x4d6   :  { %773 = vmatprep.subr.bf16.mxu1 %v788_v0 }
 0x5a3   :  { %v436_v35 = vpop.f32.mrb[6].mxu1 }
 0x5a4   :  { %v684_v36 = vpop.f32.mrb[7].mxu1  ;;  %694 = vmatmul.mubr.msk.f32.vlgmr.msra.gmra.mrb[8].mxu1 %vm117_vm1, %v436_v35 }
 0x5a5   :  { %775 = vmatpush3.bf16.msra.mxu1 %v774_v32  ;;  %704 = vmatprep.mubr.msk.f32.mxu1 %vm789_vm2, %v790_v50 }
 0x5a6   :  { %776 = vmatprep.subr.bf16.mxu1 %v788_v0 }
 0x5a9   :  { %778 = vmatpush3.bf16.msra.mxu1 %v777_v37 }
 0x5ac   :  { %705 = vmatmul.mubr.msk.f32.vlgmr.msra.gmra.mrb[10].mxu1 %vm117_vm1, %v923_v58 }
 0x677   :  { %v517_v38 = vpop.f32.mrb[8].mxu1 }
 0x678   :  { %v695_v39 = vpop.f32.mrb[9].mxu1 }
 0x67f   :  { %v587_v40 = vpop.f32.mrb[10].mxu1 }
 0x680   :  { %v588_v42 = vadd.f32 %v587_v40, %v517_v38  ;;  %v706_v43 = vpop.f32.mrb[11].mxu1 }
 0x682   :  { %v596_v44 = vadd.f32 %v610_v41, %v588_v42 }
 0x684   :  { %597 = vst [vmem:[%s1015_s2] sm:$0xff] %v596_v44 }

</bundles_post_ra>
